<compile_context>
chip_gen: v7x
topology: tpu7x:2x2x1
jax: 0.10.0
libtpu: 0.0.40
codegen_flags: <defaults>
</compile_context>

<pallas_src>
import math

import jax
import jax.numpy as jnp
from jax.experimental import pallas as pl
from jax.experimental.pallas import tpu as pltpu

# ---- small, module-consistent shapes ----------------------------------------
B = 2          # batch
T = 8          # query sequence length (x)
M = 8          # memory length (mems)
D = 32         # model dim
H = 2          # n_heads
HD = D // H    # head_dim = 16
S = M + T      # key/value sequence length


# ---- Pallas kernel -----------------------------------------------------------
def mha_kernel(c_ref, bias_ref, wqkv_ref, bqkv_ref, wo_t_ref, bo_ref, out_ref):
    # One batch element per grid step.
    c = c_ref[0]          # (S, D) f32, c = [mems; x]
    bias = bias_ref[0]    # (1, S) f32, = -1e6 * (1 - mask)

    # Fused Q/K/V projection: single MXU push (S, D) x (D, 3D).
    qkv = jnp.dot(c, wqkv_ref[...],
                  preferred_element_type=jnp.float32) + bqkv_ref[...]   # (S, 3D)

    # Query comes from the x rows (tail of c); fold the 1/sqrt(HD) scale in once.
    q = qkv[M:, 0:D] * (1.0 / math.sqrt(HD))                            # (T, D)

    acc = jnp.zeros((T, D), jnp.float32)
    for h in range(H):                       # static 2-way unroll over heads
        lo = h * HD
        q_h = q[:, lo:lo + HD]                       # (T, HD)
        k_h = qkv[:, D + lo:D + lo + HD]             # (S, HD)
        v_h = qkv[:, 2 * D + lo:2 * D + lo + HD]     # (S, HD)

        # scores = q_h @ k_h^T expressed directly (no in-kernel transpose)
        s = jax.lax.dot_general(q_h, k_h, (((1,), (1,)), ((), ())),
                                preferred_element_type=jnp.float32)     # (T, S)
        s = s + bias                                  # broadcast (1,S) -> (T,S)
        s = s - jnp.max(s, axis=-1, keepdims=True)
        e = jnp.exp(s)
        p = e * pl.reciprocal(jnp.sum(e, axis=-1, keepdims=True), approx=True)

        h_out = jnp.dot(p, v_h, preferred_element_type=jnp.float32)     # (T, HD)
        # Fold head-combine into the output projection: no lane concatenate.
        acc = acc + jnp.dot(h_out, wo_t_ref[lo:lo + HD, :],
                            preferred_element_type=jnp.float32)         # (T, D)

    out_ref[0] = (acc + bo_ref[...]).astype(out_ref.dtype)


# ---- wrapper -----------------------------------------------------------------
def mha_forward(x, mems, mask, params):
    """x: (B,T,D), mems: (B,M,D), mask: (B,S) with 1=keep -> (B,T,D)."""
    wq, bq, wk, bk, wv, bv, wo, bo = params

    c = jnp.concatenate([mems, x], axis=1)                       # (B, S, D)
    # Fused, pre-transposed projection weights (one-time XLA ops).
    w_qkv_t = jnp.concatenate([wq.T, wk.T, wv.T], axis=1)        # (D, 3D)
    b_qkv = jnp.concatenate([bq, bk, bv], axis=1)                # (1, 3D)
    wo_t = wo.T                                                  # (D, D)
    # Precompute the additive mask bias once.
    bias = (-1000000.0 * (1.0 - mask.astype(jnp.float32)))[:, None, :]   # (B, 1, S)

    # Advisory cost estimate for the XLA scheduler.
    flops = B * (2 * S * D * 3 * D          # fused QKV projection
                 + 4 * H * T * S * HD       # scores + attn@V
                 + 2 * T * D * D)           # output projection
    transcendentals = B * H * T * (S + 1)   # exp + reciprocal
    bytes_accessed = 4 * (c.size + bias.size + w_qkv_t.size + b_qkv.size
                          + wo_t.size + bo.size + B * T * D)

    grid_spec = pltpu.PrefetchScalarGridSpec(
        num_scalar_prefetch=0,
        grid=(B,),
        in_specs=[
            pl.BlockSpec((1, S, D), lambda b: (b, 0, 0)),    # c = [mems; x]
            pl.BlockSpec((1, 1, S), lambda b: (b, 0, 0)),    # mask bias
            pl.BlockSpec((D, 3 * D), lambda b: (0, 0)),      # W_qkv^T (fused)
            pl.BlockSpec((1, 3 * D), lambda b: (0, 0)),      # b_qkv (fused)
            pl.BlockSpec((D, D), lambda b: (0, 0)),          # W_o^T
            pl.BlockSpec((1, D), lambda b: (0, 0)),          # b_o
        ],
        out_specs=pl.BlockSpec((1, T, D), lambda b: (b, 0, 0)),
    )

    return pl.pallas_call(
        mha_kernel,
        out_shape=jax.ShapeDtypeStruct((B, T, D), jnp.float32),
        grid_spec=grid_spec,
        compiler_params=pltpu.CompilerParams(
            dimension_semantics=("parallel",)),
        cost_estimate=pl.CostEstimate(flops=flops,
                                      transcendentals=transcendentals,
                                      bytes_accessed=bytes_accessed),
    )(c, bias, w_qkv_t, b_qkv, wo_t, bo)


# ---- pure-JAX reference (for correctness check) ------------------------------
def mha_reference(x, mems, mask, params):
    wq, bq, wk, bk, wv, bv, wo, bo = params
    c = jnp.concatenate([mems, x], axis=1)            # (B, S, D)

    def lin(a, w, b):
        return a @ w.T + b[0]

    def split(a):  # (B, L, D) -> (B, H, L, HD)
        return a.reshape(a.shape[0], a.shape[1], H, HD).transpose(0, 2, 1, 3)

    Q = split(lin(x, wq, bq)).astype(jnp.float32)
    K = split(lin(c, wk, bk)).astype(jnp.float32)
    V = split(lin(c, wv, bv)).astype(jnp.float32)

    dot = jnp.einsum('bhtd,bhsd->bhts', Q, K) / math.sqrt(HD)
    dot = dot - 1000000.0 * (1.0 - mask[:, None, None, :])    # (B,1,1,S)
    attn = jax.nn.softmax(dot, axis=-1)
    X = jnp.einsum('bhts,bhsd->bhtd', attn, V)                 # (B,H,T,HD)
    X = X.transpose(0, 2, 1, 3).reshape(B, T, H * HD)
    return lin(X, wo, bo)


# ---- deterministic parameter init --------------------------------------------
def make_params(key):
    keys = jax.random.split(key, 8)
    scale = 0.05
    wq = scale * jax.random.normal(keys[0], (D, D), jnp.float32)
    bq = scale * jax.random.normal(keys[1], (1, D), jnp.float32)
    wk = scale * jax.random.normal(keys[2], (D, D), jnp.float32)
    bk = scale * jax.random.normal(keys[3], (1, D), jnp.float32)
    wv = scale * jax.random.normal(keys[4], (D, D), jnp.float32)
    bv = scale * jax.random.normal(keys[5], (1, D), jnp.float32)
    wo = scale * jax.random.normal(keys[6], (D, D), jnp.float32)
    bo = scale * jax.random.normal(keys[7], (1, D), jnp.float32)
    return (wq, bq, wk, bk, wv, bv, wo, bo)


if __name__ == "__main__":
    key = jax.random.PRNGKey(0)
    k_x, k_m, k_mask, k_p = jax.random.split(key, 4)

    x = jax.random.normal(k_x, (B, T, D), jnp.float32)
    mems = jax.random.normal(k_m, (B, M, D), jnp.float32)
    # binary keep-mask over the S = M + T key positions (torch passes (B, S))
    mask = (jax.random.uniform(k_mask, (B, S)) > 0.2).astype(jnp.float32)
    params = make_params(k_p)

    out = jax.block_until_ready(mha_forward(x, mems, mask, params))
    ref = mha_reference(x, mems, mask, params)

    assert out.shape == (B, T, D)
    err = jnp.max(jnp.abs(out - ref))
    # tolerance loosened slightly vs exact-divide softmax because the kernel
    # uses the EUP approximate reciprocal for the softmax denominator.
    assert jnp.allclose(out, ref, rtol=2e-3, atol=1e-3), f"max abs err = {err}"

    print("KERNEL_OK")
</pallas_src>

<mosaic_0001>
module attributes {stable_mosaic.version = 11 : i64} {
  func.func @mha_kernel(%arg0: i32, %arg1: memref<1x16x32xf32, #tpu.memory_space<vmem>>, %arg2: memref<1x1x16xf32, #tpu.memory_space<vmem>>, %arg3: memref<32x96xf32, #tpu.memory_space<vmem>>, %arg4: memref<1x96xf32, #tpu.memory_space<vmem>>, %arg5: memref<32x32xf32, #tpu.memory_space<vmem>>, %arg6: memref<1x32xf32, #tpu.memory_space<vmem>>, %arg7: memref<1x8x32xf32, #tpu.memory_space<vmem>>) attributes {dimension_semantics = [#tpu.dimension_semantics<parallel>], iteration_bounds = array<i64: 2>, scalar_prefetch = 0 : i64, scratch_operands = 0 : i64, tpu.core_type = #tpu.core_type<tc>, window_params = [{transform_indices = @transform_0, window_bounds = array<i64: 1, 16, 32>}, {transform_indices = @transform_1, window_bounds = array<i64: 1, 1, 16>}, {pipeline_mode = #tpu.pipeline_mode<synchronous>, transform_indices = @transform_2, window_bounds = array<i64: 32, 96>}, {pipeline_mode = #tpu.pipeline_mode<synchronous>, transform_indices = @transform_3, window_bounds = array<i64: 1, 96>}, {pipeline_mode = #tpu.pipeline_mode<synchronous>, transform_indices = @transform_4, window_bounds = array<i64: 32, 32>}, {pipeline_mode = #tpu.pipeline_mode<synchronous>, transform_indices = @transform_5, window_bounds = array<i64: 1, 32>}, {transform_indices = @transform_6, window_bounds = array<i64: 1, 8, 32>}]} {
    %c0 = arith.constant 0 : index
    %c0_0 = arith.constant 0 : index
    %c0_1 = arith.constant 0 : index
    %0 = vector.load %arg1[%c0, %c0_0, %c0_1] : memref<1x16x32xf32, #tpu.memory_space<vmem>>, vector<1x16x32xf32>
    %1 = vector.shape_cast %0 : vector<1x16x32xf32> to vector<16x32xf32>
    %c0_2 = arith.constant 0 : index
    %c0_3 = arith.constant 0 : index
    %c0_4 = arith.constant 0 : index
    %2 = vector.load %arg2[%c0_2, %c0_3, %c0_4] : memref<1x1x16xf32, #tpu.memory_space<vmem>>, vector<1x1x16xf32>
    %3 = vector.shape_cast %2 : vector<1x1x16xf32> to vector<1x16xf32>
    %c0_5 = arith.constant 0 : index
    %c0_6 = arith.constant 0 : index
    %4 = vector.load %arg3[%c0_5, %c0_6] : memref<32x96xf32, #tpu.memory_space<vmem>>, vector<32x96xf32>
    %cst = arith.constant dense<0.000000e+00> : vector<16x96xf32>
    %5 = tpu.matmul %1, %4, %cst {dimension_numbers = #tpu.dot_dimension_numbers<[1], [0], [0], [1], [0, 0, 1, 1], [], []>} : vector<16x32xf32>, vector<32x96xf32>, vector<16x96xf32> -> vector<16x96xf32>
    %c0_7 = arith.constant 0 : index
    %c0_8 = arith.constant 0 : index
    %6 = vector.load %arg4[%c0_7, %c0_8] : memref<1x96xf32, #tpu.memory_space<vmem>>, vector<1x96xf32>
    %7 = vector.broadcast %6 : vector<1x96xf32> to vector<16x96xf32>
    %8 = arith.addf %5, %7 : vector<16x96xf32>
    %9 = vector.extract_strided_slice %8 {offsets = [8, 0], sizes = [8, 32], strides = [1, 1]} : vector<16x96xf32> to vector<8x32xf32>
    %cst_9 = arith.constant 2.500000e-01 : f32
    %10 = vector.broadcast %cst_9 : f32 to vector<8x32xf32>
    %11 = arith.mulf %9, %10 : vector<8x32xf32>
    %cst_10 = arith.constant 0.000000e+00 : f32
    %12 = vector.broadcast %cst_10 : f32 to vector<8x32xf32>
    %13 = vector.extract_strided_slice %11 {offsets = [0, 0], sizes = [8, 16], strides = [1, 1]} : vector<8x32xf32> to vector<8x16xf32>
    %14 = vector.extract_strided_slice %8 {offsets = [0, 32], sizes = [16, 16], strides = [1, 1]} : vector<16x96xf32> to vector<16x16xf32>
    %15 = vector.extract_strided_slice %8 {offsets = [0, 64], sizes = [16, 16], strides = [1, 1]} : vector<16x96xf32> to vector<16x16xf32>
    %cst_11 = arith.constant dense<0.000000e+00> : vector<8x16xf32>
    %16 = tpu.matmul %13, %14, %cst_11 {dimension_numbers = #tpu.dot_dimension_numbers<[1], [1], [0], [0], [0, 0, 1, 0], [], []>} : vector<8x16xf32>, vector<16x16xf32>, vector<8x16xf32> -> vector<8x16xf32>
    %17 = vector.broadcast %3 : vector<1x16xf32> to vector<8x16xf32>
    %18 = arith.addf %16, %17 : vector<8x16xf32>
    %cst_12 = arith.constant dense<0xFF800000> : vector<8xf32>
    %19 = vector.multi_reduction <maximumf>, %18, %cst_12 [1] : vector<8x16xf32> to vector<8xf32>
    %20 = vector.shape_cast %19 : vector<8xf32> to vector<8x1xf32>
    %21 = vector.broadcast %20 : vector<8x1xf32> to vector<8x16xf32>
    %22 = arith.subf %18, %21 : vector<8x16xf32>
    %23 = math.exp %22 : vector<8x16xf32>
    %cst_13 = arith.constant dense<0.000000e+00> : vector<8xf32>
    %24 = vector.multi_reduction <add>, %23, %cst_13 [1] : vector<8x16xf32> to vector<8xf32>
    %25 = vector.shape_cast %24 : vector<8xf32> to vector<8x1xf32>
    %26 = tpu.reciprocal %25 {approx = true} : vector<8x1xf32> -> vector<8x1xf32>
    %27 = vector.broadcast %26 : vector<8x1xf32> to vector<8x16xf32>
    %28 = arith.mulf %23, %27 : vector<8x16xf32>
    %cst_14 = arith.constant dense<0.000000e+00> : vector<8x16xf32>
    %29 = tpu.matmul %28, %15, %cst_14 {dimension_numbers = #tpu.dot_dimension_numbers<[1], [0], [0], [1], [0, 0, 1, 1], [], []>} : vector<8x16xf32>, vector<16x16xf32>, vector<8x16xf32> -> vector<8x16xf32>
    %c0_15 = arith.constant 0 : index
    %c0_16 = arith.constant 0 : index
    %30 = vector.load %arg5[%c0_15, %c0_16] : memref<32x32xf32, #tpu.memory_space<vmem>>, vector<16x32xf32>
    %cst_17 = arith.constant dense<0.000000e+00> : vector<8x32xf32>
    %31 = tpu.matmul %29, %30, %cst_17 {dimension_numbers = #tpu.dot_dimension_numbers<[1], [0], [0], [1], [0, 0, 1, 1], [], []>} : vector<8x16xf32>, vector<16x32xf32>, vector<8x32xf32> -> vector<8x32xf32>
    %32 = arith.addf %12, %31 : vector<8x32xf32>
    %33 = vector.extract_strided_slice %11 {offsets = [0, 16], sizes = [8, 16], strides = [1, 1]} : vector<8x32xf32> to vector<8x16xf32>
    %34 = vector.extract_strided_slice %8 {offsets = [0, 48], sizes = [16, 16], strides = [1, 1]} : vector<16x96xf32> to vector<16x16xf32>
    %35 = vector.extract_strided_slice %8 {offsets = [0, 80], sizes = [16, 16], strides = [1, 1]} : vector<16x96xf32> to vector<16x16xf32>
    %cst_18 = arith.constant dense<0.000000e+00> : vector<8x16xf32>
    %36 = tpu.matmul %33, %34, %cst_18 {dimension_numbers = #tpu.dot_dimension_numbers<[1], [1], [0], [0], [0, 0, 1, 0], [], []>} : vector<8x16xf32>, vector<16x16xf32>, vector<8x16xf32> -> vector<8x16xf32>
    %37 = vector.broadcast %3 : vector<1x16xf32> to vector<8x16xf32>
    %38 = arith.addf %36, %37 : vector<8x16xf32>
    %cst_19 = arith.constant dense<0xFF800000> : vector<8xf32>
    %39 = vector.multi_reduction <maximumf>, %38, %cst_19 [1] : vector<8x16xf32> to vector<8xf32>
    %40 = vector.shape_cast %39 : vector<8xf32> to vector<8x1xf32>
    %41 = vector.broadcast %40 : vector<8x1xf32> to vector<8x16xf32>
    %42 = arith.subf %38, %41 : vector<8x16xf32>
    %43 = math.exp %42 : vector<8x16xf32>
    %cst_20 = arith.constant dense<0.000000e+00> : vector<8xf32>
    %44 = vector.multi_reduction <add>, %43, %cst_20 [1] : vector<8x16xf32> to vector<8xf32>
    %45 = vector.shape_cast %44 : vector<8xf32> to vector<8x1xf32>
    %46 = tpu.reciprocal %45 {approx = true} : vector<8x1xf32> -> vector<8x1xf32>
    %47 = vector.broadcast %46 : vector<8x1xf32> to vector<8x16xf32>
    %48 = arith.mulf %43, %47 : vector<8x16xf32>
    %cst_21 = arith.constant dense<0.000000e+00> : vector<8x16xf32>
    %49 = tpu.matmul %48, %35, %cst_21 {dimension_numbers = #tpu.dot_dimension_numbers<[1], [0], [0], [1], [0, 0, 1, 1], [], []>} : vector<8x16xf32>, vector<16x16xf32>, vector<8x16xf32> -> vector<8x16xf32>
    %c16 = arith.constant 16 : index
    %c0_22 = arith.constant 0 : index
    %50 = vector.load %arg5[%c16, %c0_22] : memref<32x32xf32, #tpu.memory_space<vmem>>, vector<16x32xf32>
    %cst_23 = arith.constant dense<0.000000e+00> : vector<8x32xf32>
    %51 = tpu.matmul %49, %50, %cst_23 {dimension_numbers = #tpu.dot_dimension_numbers<[1], [0], [0], [1], [0, 0, 1, 1], [], []>} : vector<8x16xf32>, vector<16x32xf32>, vector<8x32xf32> -> vector<8x32xf32>
    %52 = arith.addf %32, %51 : vector<8x32xf32>
    %c0_24 = arith.constant 0 : index
    %c0_25 = arith.constant 0 : index
    %53 = vector.load %arg6[%c0_24, %c0_25] : memref<1x32xf32, #tpu.memory_space<vmem>>, vector<1x32xf32>
    %54 = vector.broadcast %53 : vector<1x32xf32> to vector<8x32xf32>
    %55 = arith.addf %52, %54 : vector<8x32xf32>
    %c0_26 = arith.constant 0 : index
    %c0_27 = arith.constant 0 : index
    %c0_28 = arith.constant 0 : index
    %56 = vector.load %arg7[%c0_26, %c0_27, %c0_28] : memref<1x8x32xf32, #tpu.memory_space<vmem>>, vector<1x8x32xf32>
    %57 = vector.shape_cast %56 : vector<1x8x32xf32> to vector<8x32xf32>
    %58 = vector.shape_cast %55 : vector<8x32xf32> to vector<1x8x32xf32>
    tpu.vector_store %arg7[%c0_26, %c0_27, %c0_28], %58 {strides = array<i32>} : memref<1x8x32xf32, #tpu.memory_space<vmem>>, vector<1x8x32xf32>,
    return
  }
  func.func @transform_0(%arg0: i32) -> (i32, i32, i32) {
    %c0_i32 = arith.constant 0 : i32
    %c0_i32_0 = arith.constant 0 : i32
    %c0_i32_1 = arith.constant 0 : i32
    return %arg0, %c0_i32, %c0_i32_0 : i32, i32, i32
  }
  func.func @transform_1(%arg0: i32) -> (i32, i32, i32) {
    %c0_i32 = arith.constant 0 : i32
    %c0_i32_0 = arith.constant 0 : i32
    %c0_i32_1 = arith.constant 0 : i32
    return %arg0, %c0_i32, %c0_i32_0 : i32, i32, i32
  }
  func.func @transform_2(%arg0: i32) -> (i32, i32) {
    %c0_i32 = arith.constant 0 : i32
    %c0_i32_0 = arith.constant 0 : i32
    %c0_i32_1 = arith.constant 0 : i32
    return %c0_i32, %c0_i32_0 : i32, i32
  }
  func.func @transform_3(%arg0: i32) -> (i32, i32) {
    %c0_i32 = arith.constant 0 : i32
    %c0_i32_0 = arith.constant 0 : i32
    %c0_i32_1 = arith.constant 0 : i32
    return %c0_i32, %c0_i32_0 : i32, i32
  }
  func.func @transform_4(%arg0: i32) -> (i32, i32) {
    %c0_i32 = arith.constant 0 : i32
    %c0_i32_0 = arith.constant 0 : i32
    %c0_i32_1 = arith.constant 0 : i32
    return %c0_i32, %c0_i32_0 : i32, i32
  }
  func.func @transform_5(%arg0: i32) -> (i32, i32) {
    %c0_i32 = arith.constant 0 : i32
    %c0_i32_0 = arith.constant 0 : i32
    %c0_i32_1 = arith.constant 0 : i32
    return %c0_i32, %c0_i32_0 : i32, i32
  }
  func.func @transform_6(%arg0: i32) -> (i32, i32, i32) {
    %c0_i32 = arith.constant 0 : i32
    %c0_i32_0 = arith.constant 0 : i32
    %c0_i32_1 = arith.constant 0 : i32
    return %arg0, %c0_i32, %c0_i32_0 : i32, i32, i32
  }
}

</mosaic_0001>

<bundles_post_ra>
// kernel: tpu_custom_call.1
= control target key start
LH: loop header
LB: loop body
LE: loop exit
PB: predicated region body
PF: predicated region fallthrough
CT: control target
= control target key end

     0   :  { %11 = vsyncpa [#allocation3], 0  ;;  %s1769_s0 = inlined_call_operand.hbm [shape: f32[2,16,32], index: 0, kind: input, shape index: {}]   ;;  %s1770_s1 = inlined_call_operand.vmem [shape: f32[2,1,16], index: 1, kind: input, shape index: {}]   ;;  %s1771_s2 = inlined_call_operand.hbm [shape: f32[32,96], index: 2, kind: input, shape index: {}]   ;;  %s1772_s3 = inlined_call_operand.vmem [shape: f32[1,96], index: 3, kind: input, shape index: {}]   ;;  %s1773_s4 = inlined_call_operand.hbm [shape: f32[32,32], index: 4, kind: input, shape index: {}]   ;;  %s1774_s5 = inlined_call_operand.vmem [shape: f32[1,32], index: 5, kind: input, shape index: {}]   ;;  %s1775_s6 = inlined_call_operand.hbm [shape: f32[2,8,32], index: 6, kind: output, shape index: {}]  }
   0x1   :  { %13 = vsyncpa [#allocation3 + $0x1], 0 }
   0x2   :  { %14 = vsyncpa [#allocation6], 0 }
   0x3   :  { %15 = vsyncpa [#allocation4], 0 }
   0x4   :  { %17 = vsyncpa [#allocation4 + $0x1], 0  ;;  %s1483_s21 = smov 0   ;;  %s1485_s22 = smov 0  }
   0x5   :  { %s1487_s23 = smov 0   ;;  %s1489_s24 = smov 0  }
   0x6 LB: > { %s1504_s25 = sadd.s32 4294967295, %s1432_s24   ;;  %s1033_s26 = sadd.s32 4294967294, %s1432_s24   ;;  %s1432_s24 = sphi %s1489_s24, %s1795_s24   ;;  %s1428_s23 = sphi %s1487_s23, %s1794_s23   ;;  %s1424_s22 = sphi %s1485_s22, %s1793_s22   ;;  %s1420_s21 = sphi %s1483_s21, %s1792_s21  }
   0x7   : > { %p43_p0 = scmp.ne.s32.totalorder %s1424_s22, %s1420_s21  ;;  %p1776_p1 = scmp.eq.s32.totalorder %s1504_s25, 0 }
   0x8   : > { %p183_p3 = scmp.eq.s32.totalorder %s1033_s26, 1  ;;  %p1034_p5 = scmp.ge.s32.totalorder %s1432_s24, 1 }
   0x9   : > { %p1513_p4 = por %p1776_p1, %p43_p0  ;;  %p190_p7 = scmp.lt.s32.totalorder %s1432_s24, 3 }
   0xa   : > { %p1518_p6 = por %p183_p3, %p43_p0  ;;  %s1434_s30 = smov [#allocation5]  }
   0xb   : > { %s1779_s27 = scalar_select %p1513_p4, 1, 0 }
   0xc   : > { %s1780_s28 = scalar_select %p1518_p6, 1, 0 }
   0xd   : > { %p1523_p8 = pnand %p1034_p5, %p190_p7  ;;  %s202_s7 = sshll.u32 %s1434_s30, 4  ;;  %s1527_s7 = int_to_ptr.vmem [resolvable:$true] %s202_s7 }
   0xe   : > { %s1435_s9 = smov [#allocation7]   ;;  %s1276_s13 = scalar_lea.hbm %s1771_s2, 512 }
   0xf   : > { %p1183_p9 = pneg %p1523_p8  ;;  %s218_s10 = sshll.u32 %s1435_s9, 4  ;;  %s1538_s10 = int_to_ptr.vmem [resolvable:$true] %s218_s10 }
  0x10   : > { %p1277_p12 = scmp.ne.s32.totalorder %s1771_s2, %s1276_s13  ;;  %p1283_p5 = scmp.lt.u32.totalorder %s1276_s13, %s1771_s2 }
  0x11   : > { %p1534_p11 = pnand %p1183_p9, %p1776_p1 }
  0x13   : > { %p1278_p13 = pneg %p1534_p11 }
  0x15   : > { %p1279_p0 = pnand %p1278_p13, %p1277_p12 }
  0x17   : > { %p1280_p3 = pneg %p1279_p0 }
  0x19   : > { %p1285_p7 = pnand %p1283_p5, %p1280_p3 }
  0x1b   : > { %1288 = shalt.err (!%p1285_p7)
}
  0x1c   : > { %s1289_s18 = scalar_lea.vmem %s1527_s7, 512  ;;  %p1297_p2 = scmp.lt.s32.totalorder %s1527_s7, %s1527_s7 }
  0x1d   : > { %p1290_p9 = scmp.ne.s32.totalorder %s1527_s7, %s1289_s18  ;;  %p1298_p12 = scmp.lt.s32.totalorder %s1289_s18, %s1289_s18 }
  0x1f   : > { %p1292_p10 = pnand %p1290_p9, %p1278_p13  ;;  %p1299_p0 = por %p1298_p12, %p1297_p2 }
  0x21   : > { %p1293_p1 = pneg %p1292_p10 }
  0x23   : > { %p1300_p6 = pnand %p1299_p0, %p1293_p1 }
  0x25   : > { %1303 = shalt.err (!%p1300_p6)
}
  0x26   : > { %s1436_s19 = smov 128   ;;  %s1437_s20 = smov 8  }
  0x27   : > { %1186 = dma.hbm_to_vmem [thread:$0]  (!%p1534_p11), %s1771_s2, 512, %s1527_s7, [#allocation6], %s1436_s19, %s1436_s19, %s1437_s20  }
  0x28   : > { %s1304_s12 = scalar_lea.hbm %s1773_s4, 512 }
  0x29   : > { %p1305_p1 = scmp.ne.s32.totalorder %s1773_s4, %s1304_s12  ;;  %p1311_p10 = scmp.lt.u32.totalorder %s1304_s12, %s1773_s4 }
  0x2b   : > { %p1307_p2 = pnand %p1305_p1, %p1278_p13 }
  0x2d   : > { %p1308_p6 = pneg %p1307_p2 }
  0x2f   : > { %p1313_p3 = pnand %p1311_p10, %p1308_p6 }
  0x31   : > { %1316 = shalt.err (!%p1313_p3)
}
  0x32   : > { %s1317_s7 = scalar_lea.vmem %s1538_s10, 512  ;;  %p1325_p12 = scmp.lt.s32.totalorder %s1538_s10, %s1538_s10 }
  0x33   : > { %p1318_p5 = scmp.ne.s32.totalorder %s1538_s10, %s1317_s7  ;;  %p1326_p0 = scmp.lt.s32.totalorder %s1317_s7, %s1317_s7 }
  0x35   : > { %p1320_p7 = pnand %p1318_p5, %p1278_p13  ;;  %p1327_p1 = por %p1326_p0, %p1325_p12 }
  0x37   : > { %p1321_p9 = pneg %p1320_p7 }
  0x39   : > { %p1328_p2 = pnand %p1327_p1, %p1321_p9 }
  0x3b   : > { %1331 = shalt.err (!%p1328_p2)
}
  0x3c   : > { %1189 = dma.hbm_to_vmem [thread:$0]  (!%p1534_p11), %s1773_s4, 512, %s1538_s10, [#allocation6], %s1436_s19, %s1436_s19, %s1437_s20  }
  0x3d   : > { %s1599_s8 = sadd.s32 1, %s1432_s24   ;;  %s30_s26 = sadd.s32 1, %s1428_s23 }
  0x3e   : > { %s27_s30 = ssub.s32 %s1432_s24, %s1599_s8  ;;  %p37_p13 = scmp.ne.s32.totalorder %s1428_s23, %s1424_s22 }
  0x3f   : > { %p28_p6 = scmp.eq.s32.totalorder %s27_s30, 0  ;;  %p38_p10 = scmp.eq.s32.totalorder %s1432_s24, 0 }
  0x40   : > { %p1783_p3 = scmp.eq.s32.totalorder %s1504_s25, 1  ;;  %p1200_p7 = scmp.lt.s32.totalorder %s1432_s24, 2 }
  0x41   : > { %s1615_s11 = scalar_select %p28_p6, %s1428_s23, %s30_s26  }
  0x42   : > { %p1609_p5 = por %p1783_p3, %p37_p13  ;;  %p39_p9 = por %p38_p10, %p37_p13 }
  0x43   : > { %s235_s12 = sand.u32 1, %s1428_s23   ;;  %s1065_s10 = sshll.u32 %s1432_s24, 8 }
  0x44   : > { %s1784_s9 = scalar_select %p1609_p5, 1, 0 }
  0x45   : > { %s1038_s13 = sshll.u32 %s235_s12, 4  ;;  %s1622_s16 = scalar_lea.hbm %s1769_s0, %s1065_s10 }
  0x46   : > { %s239_s7 = scalar_lea.vmem [#allocation2], %s1038_s13  ;;  %p1626_p11 = pnand %p1200_p7, %p39_p9 }
  0x47   : > { %s246_s17 = sshll.u32 %s239_s7, 4  ;;  %s1630_s26 = scalar_lea.sflag [#allocation3], %s235_s12  ;;  %s1624_s17 = int_to_ptr.vmem [resolvable:$true] %s246_s17 }
  0x48   : > { %s1332_s30 = scalar_lea.hbm %s1622_s16, 256  ;;  %p1334_p0 = pneg %p1626_p11 }
  0x49   : > { %p1333_p12 = scmp.ne.s32.totalorder %s1622_s16, %s1332_s30  ;;  %s1337_s14 = scalar_lea.hbm %s1769_s0, 512 }
  0x4a   : > { %p1338_p13 = scmp.lt.u32.totalorder %s1622_s16, %s1769_s0  ;;  %p1339_p6 = scmp.lt.u32.totalorder %s1337_s14, %s1332_s30 }
  0x4b   : > { %p1335_p1 = pnand %p1334_p0, %p1333_p12  ;;  %p1341_p3 = scmp.lt.u32.totalorder %s1332_s30, %s1622_s16 }
  0x4c   : > { %p1340_p10 = por %p1339_p6, %p1338_p13 }
  0x4d   : > { %p1336_p2 = pneg %p1335_p1 }
  0x4e   : > { %p1342_p7 = por %p1341_p3, %p1340_p10 }
  0x50   : > { %p1343_p9 = pnand %p1342_p7, %p1336_p2 }
  0x52   : > { %1346 = shalt.err (!%p1343_p9)
}
  0x53   : > { %s1347_s12 = scalar_lea.vmem %s1624_s17, 256  ;;  %s1438_s13 = smov [#allocation2]  }
  0x54   : > { %p1348_p12 = scmp.ne.s32.totalorder %s1624_s17, %s1347_s12  ;;  %s1352_s10 = sshll.u32 %s1438_s13, 4  ;;  %s1353_s10 = int_to_ptr.vmem [resolvable:$false] %s1352_s10 }
  0x55   : > { %s1354_s15 = scalar_lea.vmem %s1353_s10, 512  ;;  %p1355_p4 = scmp.lt.s32.totalorder %s1624_s17, %s1353_s10 }
  0x56   : > { %p1350_p1 = pnand %p1348_p12, %p1334_p0  ;;  %p1356_p13 = scmp.lt.s32.totalorder %s1354_s15, %s1347_s12 }
  0x58   : > { %p1351_p5 = pneg %p1350_p1  ;;  %p1357_p6 = por %p1356_p13, %p1355_p4 }
  0x5a   : > { %p1358_p10 = pnand %p1357_p6, %p1351_p5 }
  0x5c   : > { %1361 = shalt.err (!%p1358_p10)
}
  0x5d   : > { %1193 = dma.hbm_to_vmem [thread:$0]  (!%p1626_p11), %s1622_s16, 256, %s1624_s17, %s1630_s26, %s1436_s19, %s1436_s19, %s1437_s20  }
  0x5e   : > { %264 = sbr.rel (%p1523_p8) target bundleno = 1437 (0x59d), region = 44  ;;  %s1664_s30 = sand.u32 (!%p1523_p8), 1, %s1424_s22  }
  0x5f   : > { %s1042_s14 = sshll.u32 (!%p1523_p8), %s1664_s30, 4  ;;  %s267_s7 = scalar_lea.sflag (!%p1523_p8), [#allocation3], %s1664_s30 }
  0x60   : > { %s270_s12 = scalar_lea.vmem (!%p1523_p8), [#allocation2], %s1042_s14  ;;  %p1786_p4 = scmp.ne.s32.totalorder (!%p1523_p8), %s1779_s27, 0 }
  0x65   : > { %1407 = dma.done.wait (%p1786_p4), %s267_s7, 256  }
  0x66   : > { %1409 = vsyncadd (%p1786_p4), %s267_s7, 4294967040  ;;  %p1787_p5 = scmp.eq.s32.totalorder %s1504_s25, 0 }
  0x68   : > { %1411 = dma.done.wait (%p1787_p5), [#allocation6], 1024   ;;  %p1788_p11 = pmov %p1787_p5 }
  0x69   : > { %vm327_vm0 = vcmask 261120   ;;  %v316_v0 = vld [vmem:[#allocation5] sm:$0xff]  ;;  %v317_v1 = vld [vmem:[#allocation5 + $0x8] sm:$0xff]  ;;  %v318_v2 = vld [vmem:[#allocation5 + $0x10] sm:$0xff]  ;;  %v1439_v8 = vmov 0.0|0.0   ;;  %vm1440_vm1 = vmmov 0  }
  0x6a   : > { %1413 = vsyncadd (%p1788_p11), [#allocation6], 4294966272  ;;  %v1143_v3 = vpack.c.bf16 %v317_v1, %v316_v0  ;;  %v319_v4 = vld [vmem:[#allocation5 + $0x18] sm:$0xff]  ;;  %v313_v5 = vld [vmem:[%s270_s12] sm:$0xff]  ;;  %1151 = vmatprep.subr.bf16.mxu1 %v1439_v8  ;;  %v1441_v11 = vmov 0.0   ;;  %s1442_s19 = smov 112  }
  0x6b   : > { %v1147_v6 = vpack.c.bf16 %v319_v4, %v318_v2  ;;  %1098 = vmatprep.mubr.msk.f32.mxu0 %vm327_vm0, %v313_v5  ;;  %v314_v7 = vld [vmem:[%s270_s12 + $0x8] sm:$0xff]  ;;  %v1046_v9 = vld [vmem:[%s1772_s3] ss:$0 sm:$0xff]  ;;  %1105 = vmatprep.mubr.msk.f32.mxu1 %vm1440_vm1, %v1441_v11  ;;  %s1443_s20 = smov 96   ;;  %s1444_s16 = smov 80   ;;  %vm422_vm2 = vcmask 130048  }
  0x6c   : > { %1144 = vmatprep.subr.bf16.mxu0 %v1143_v3  ;;  %vm1153_vm3 = vmpackc.low %vm422_vm2, %vm422_vm2  ;;  %p310_p8 = scmp.lt.s32.totalorder %s1504_s25, 1  ;;  %s1445_s10 = smov 64   ;;  %v590_v45 = vld [vmem:[#allocation7] sm:$0xff]  ;;  %v591_v46 = vld [vmem:[#allocation7 + $0x8] sm:$0xff] }
  0x6d   : > { %1146 = vmatpush3.bf16.msra.mxu0 %v1143_v3  ;;  %s1446_s15 = smov 48   ;;  %v1169_v47 = vpack.c.bf16 %v591_v46, %v590_v45  ;;  %v764_v62 = vld [vmem:[#allocation7 + $0x10] sm:$0xff]  ;;  %v765_v63 = vld [vmem:[#allocation7 + $0x18] sm:$0xff]  ;;  %s1045_s14 = sshll.u32 %s1664_s30, 3 }
  0x6e   : > { %1148 = vmatprep.subr.bf16.mxu0 %v1147_v6  ;;  %s311_s17 = scalar_select %p310_p8, %s1504_s25, 1  ;;  %v1166_v0 = vpack.c.bf16 %v765_v63, %v764_v62 }
  0x6f   : > { %s1062_s27 = sshll.u32 %s1504_s25, 7  ;;  %s309_s29 = scalar_lea.vmem [#allocation8], %s1045_s14 }
  0x70   : > { %s312_s13 = scalar_lea.vmem %s1770_s1, %s311_s17  ;;  %s1724_s17 = scalar_lea.hbm %s1775_s6, %s1062_s27 }
  0x71   : > { %1150 = vmatpush3.bf16.msra.mxu0 %v1147_v6  ;;  %v1049_v26 = vld [vmem:[%s312_s13] ss:$0 sm:$0xff]  ;;  %s922_s18 = scalar_lea.sflag [#allocation4], %s1664_s30  ;;  %p1789_p2 = scmp.ne.s32.totalorder %s1784_s9, 0 }
  0x72   : > { %1155 = vmatprep.subr.bf16.mxu0 %v1439_v8  ;;  %s1447_s25 = smov [#allocation8]  }
  0x73   : > { %s1366_s13 = sshll.u32 %s1447_s25, 4  ;;  %s1367_s13 = int_to_ptr.vmem [resolvable:$false] %s1366_s13 }
  0x74   : > { %1099 = vmatmul.mubr.msk.f32.vlgmr.msra.gmra.mrb[0].mxu0 %vm327_vm0, %v314_v7 }
  0x75   : > { %1112 = vmatprep.mubr.msk.f32.mxu0 %vm1440_vm1, %v1441_v11 }
 0x147   : > { %v1100_v10 = vpop.f32.mrb[0].mxu0 }
 0x148   : > { %v406_v12 = vadd.f32 %v1100_v10, %v1046_v9  ;;  %v400_v13 = vpop.f32.mrb[1].mxu0 }
 0x149   : > { %v401_v14 = vadd.f32 %v1046_v9, %v400_v13 }
 0x14a   : > { %v409_v15 = vmul.f32 0.25, %v406_v12 }
 0x14b   : > { %v1248_v16 = vpack.i.bf16 %v406_v12, %v401_v14 }
 0x14c   : > { %592 = vrot.lane.b32.xlu1 %v409_v15, %s1442_s19  ;;  %s935_s19 = sshll.u32 %s309_s29, 4  ;;  %s1726_s19 = int_to_ptr.vmem [resolvable:$true] %s935_s19 }
 0x14d   : > { %1249 = vrot.lane.b32.xlu0 %v1248_v16, %s1443_s20  ;;  %s1362_s26 = scalar_lea.vmem %s1726_s19, 128  ;;  %p1369_p9 = scmp.lt.s32.totalorder %s1726_s19, %s1367_s13 }
 0x14e   : > { %p1363_p0 = scmp.ne.s32.totalorder %s1726_s19, %s1362_s26 }
 0x150   : > { %p1364_p3 = pnand %p1363_p0, %p1789_p2 }
 0x151   : > { %1254 = vrot.lane.b32.xlu0 %v1248_v16, %s1444_s16 }
 0x152   : > { %p1365_p7 = pneg %p1364_p3 }
 0x1be   : > { %v593_v25 = vpop.permute.xlu1 %592 }
 0x1bf   : > { %v1250_v17 = vpop.permute.xlu0 %1249 }
 0x1c0   : > { %v1252_v18 = vunpack.i.h.bf16 %v1250_v17  ;;  %v1251_v19 = vunpack.i.l.bf16 %v1250_v17 }
 0x1c2   : > { %v1152_v20 = vpack.c.bf16 %v1252_v18, %v1251_v19 }
 0x1c3   : > { %v1255_v21 = vpop.permute.xlu0 %1254 }
 0x1c4   : > { %1154 = vmatpush3.bf16.xpose.msk.msra.mxu1 %vm1153_vm3, %v1152_v20  ;;  %v1257_v22 = vunpack.i.h.bf16 %v1255_v21  ;;  %v1256_v23 = vunpack.i.l.bf16 %v1255_v21 }
 0x1c5   : > { %1158 = vmatprep.subr.bf16.mxu1 %v1439_v8 }
 0x1c6   : > { %v1159_v24 = vpack.c.bf16 %v1257_v22, %v1256_v23 }
 0x1cb   : > { %1106 = vmatmul.mubr.msk.f32.vlgmr.msra.gmra.mrb[0].mxu1 %vm422_vm2, %v409_v15 }
 0x1cc   : > { %1161 = vmatpush3.bf16.xpose.msk.msra.mxu1 %vm1153_vm3, %v1159_v24  ;;  %1119 = vmatprep.mubr.msk.f32.mxu1 %vm1440_vm1, %v1441_v11 }
 0x1cd   : > { %1168 = vmatprep.subr.bf16.mxu1 %v1439_v8 }
 0x1d3   : > { %1120 = vmatmul.mubr.msk.f32.vlgmr.msra.gmra.mrb[2].mxu1 %vm422_vm2, %v593_v25 }
 0x1d4   : > { %1140 = vmatprep.mubr.msk.f32.mxu1 %vm1440_vm1, %v1441_v11  ;;  %1170 = vmatpush3.bf16.msra.mxu1 %v1169_v47 }
 0x29e   : > { %v496_v27 = vpop.f32.mrb[0].mxu1 }
 0x29f   : > { %v497_v28 = vadd.f32 %v1049_v26, %v496_v27  ;;  %v1107_v29 = vpop.f32.mrb[1].mxu1 }
 0x2a1   : > { %v500_v30 = vsel %vm422_vm2, %v497_v28, -inf }
 0x2a2   : > { %501 = vmax.xlane.f32.xlu1 %v500_v30 }
 0x2a6   : > { %v670_v31 = vpop.f32.mrb[2].mxu1 }
 0x2a7   : > { %v671_v32 = vadd.f32 %v1049_v26, %v670_v31  ;;  %v1121_v33 = vpop.f32.mrb[3].mxu1 }
 0x2a9   : > { %v674_v34 = vsel %vm422_vm2, %v671_v32, -inf }
 0x2aa   : > { %675 = vmax.xlane.f32.xlu0 %v674_v34 }
 0x32f   : > { %v502_v35 = vpop.xlane.xlu1 %501 }
 0x330   : > { %v503_v36 = vsub.f32 %v497_v28, %v502_v35 }
 0x332   : > { %v504_v37 = vmul.f32 1.442695, %v503_v36 }
 0x334   : > { %1268 = vpow2.f32 %v504_v37 }
 0x337   : > { %v676_v38 = vpop.xlane.xlu0 %675 }
 0x338   : > { %v677_v39 = vsub.f32 %v671_v32, %v676_v38 }
 0x33a   : > { %v678_v40 = vmul.f32 1.442695, %v677_v39 }
 0x33c   : > { %1270 = vpow2.f32 %v678_v40 }
 0x33e   : > { %v1269_v41 = vpop.eup %1268 }
 0x33f   : > { %v506_v42 = vsel %vm422_vm2, %v1269_v41, 0.0 }
 0x340   : > { %507 = vadd.xlane.f32.xlu0 %v506_v42 }
 0x346   : > { %v1271_v43 = vpop.eup %1270 }
 0x347   : > { %v680_v44 = vsel %vm422_vm2, %v1271_v43, 0.0 }
 0x348   : > { %681 = vadd.xlane.f32.xlu1 %v680_v44 }
 0x356   : > { %1259 = vrot.lane.b32.xlu0 %v1248_v16, %s1445_s10  ;;  %s1368_s10 = scalar_lea.vmem %s1367_s13, 256 }
 0x357   : > { %p1370_p12 = scmp.lt.s32.totalorder %s1368_s10, %s1362_s26 }
 0x359   : > { %1264 = vrot.lane.b32.xlu1 %v1248_v16, %s1446_s15  ;;  %p1371_p1 = por %p1370_p12, %p1369_p9 }
 0x35b   : > { %p1372_p13 = pnand %p1371_p1, %p1365_p7 }
 0x3cd   : > { %v508_v48 = vpop.xlane.xlu0 %507 }
 0x3ce   : > { %1272 = vrcp.f32 %v508_v48 }
 0x3d1   : > { %v1260_v49 = vpop.permute.xlu0 %1259 }
 0x3d2   : > { %v1262_v50 = vunpack.i.h.bf16 %v1260_v49  ;;  %v1261_v51 = vunpack.i.l.bf16 %v1260_v49 }
 0x3d4   : > { %v1156_v52 = vpack.c.bf16 %v1262_v50, %v1261_v51 }
 0x3d5   : > { %v682_v53 = vpop.xlane.xlu1 %681 }
 0x3d6   : > { %1274 = vrcp.f32 %v682_v53  ;;  %1157 = vmatpush3.bf16.msra.mxu0 %v1156_v52 }
 0x3d7   : > { %1162 = vmatprep.subr.bf16.mxu0 %v1439_v8 }
 0x3d8   : > { %v1273_v54 = vpop.eup %1272 }
 0x3d9   : > { %v510_v55 = vmul.f32 %v1273_v54, %v1269_v41  ;;  %v1265_v56 = vpop.permute.xlu1 %1264 }
 0x3da   : > { %v1267_v57 = vunpack.i.h.bf16 %v1265_v56  ;;  %v1266_v58 = vunpack.i.l.bf16 %v1265_v56 }
 0x3db   : > { %1113 = vmatmul.mubr.msk.f32.vlgmr.msra.gmra.mrb[2].mxu0 %vm422_vm2, %v510_v55 }
 0x3dc   : > { %v1163_v59 = vpack.c.bf16 %v1267_v57, %v1266_v58  ;;  %1126 = vmatprep.mubr.msk.f32.mxu0 %vm1440_vm1, %v1441_v11 }
 0x3de   : > { %1164 = vmatpush3.bf16.msra.mxu0 %v1163_v59 }
 0x3df   : > { %1165 = vmatprep.subr.bf16.mxu0 %v1439_v8  ;;  %v1060_v8 = vld [vmem:[%s1774_s5] ss:$0 sm:$0xff] }
 0x3e0   : > { %v1275_v60 = vpop.eup %1274 }
 0x3e1   : > { %v684_v61 = vmul.f32 %v1275_v60, %v1271_v43 }
 0x3e3   : > { %1127 = vmatmul.mubr.msk.f32.vlgmr.msra.gmra.mrb[4].mxu0 %vm422_vm2, %v684_v61 }
 0x3e4   : > { %1133 = vmatprep.mubr.msk.f32.mxu0 %vm1440_vm1, %v1441_v11  ;;  %1167 = vmatpush3.bf16.msra.mxu0 %v1166_v0 }
 0x4ae   : > { %v586_v1 = vpop.f32.mrb[2].mxu0 }
 0x4af   : > { %v1114_v2 = vpop.f32.mrb[3].mxu0  ;;  %1141 = vmatmul.mubr.msk.f32.vlgmr.msra.gmra.mrb[4].mxu1 %vm422_vm2, %v586_v1 }
 0x4b6   : > { %v760_v3 = vpop.f32.mrb[4].mxu0 }
 0x4b7   : > { %v1128_v4 = vpop.f32.mrb[5].mxu0  ;;  %1134 = vmatmul.mubr.msk.f32.vlgmr.msra.gmra.mrb[6].mxu0 %vm422_vm2, %v760_v3 }
 0x582   : > { %v908_v5 = vpop.f32.mrb[4].mxu1 }
 0x583   : > { %v1142_v6 = vpop.f32.mrb[5].mxu1 }
 0x58a   : > { %v835_v7 = vpop.f32.mrb[6].mxu0 }
 0x58b   : > { %v909_v9 = vadd.f32 %v908_v5, %v835_v7  ;;  %v1135_v10 = vpop.f32.mrb[7].mxu0 }
 0x58d   : > { %v919_v11 = vadd.f32 %v1060_v8, %v909_v9 }
 0x58f   : > { %920 = vst.msk [vmem:[%s309_s29] sm:$0xff] %vm327_vm0, %v919_v11 }
 0x590   : > { %1375 = shalt.err (!%p1372_p13)
}
 0x591   : > { %s1376_s30 = scalar_lea.hbm %s1724_s17, 128  ;;  %s1380_s7 = scalar_lea.hbm %s1775_s6, 256 }
 0x592   : > { %p1377_p6 = scmp.ne.s32.totalorder %s1724_s17, %s1376_s30  ;;  %p1381_p5 = scmp.lt.u32.totalorder %s1724_s17, %s1775_s6 }
 0x593   : > { %p1382_p11 = scmp.lt.u32.totalorder %s1380_s7, %s1376_s30  ;;  %p1384_p0 = scmp.lt.u32.totalorder %s1376_s30, %s1724_s17 }
 0x594   : > { %p1378_p10 = pnand %p1377_p6, %p1789_p2 }
 0x595   : > { %p1383_p8 = por %p1382_p11, %p1381_p5 }
 0x596   : > { %p1379_p4 = pneg %p1378_p10 }
 0x597   : > { %p1385_p3 = por %p1384_p0, %p1383_p8 }
 0x599   : > { %p1386_p7 = pnand %p1385_p3, %p1379_p4 }
 0x59b   : > { %1389 = shalt.err (!%p1386_p7)
}
 0x59c   : > { %1181 = dma.vmem_to_hbm [thread:$0]  (%p1789_p2), %s1726_s19, 128, %s1724_s17, %s922_s18  }
 0x59d PF: > { %s947_s29 = sand.u32 1, %s1420_s21   ;;  %p1790_p9 = scmp.ne.s32.totalorder %s1780_s28, 0 }
 0x59e   : > { %p1791_p12 = scmp.ge.s32.totalorder %s1432_s24, 2  ;;  %s948_s20 = scalar_lea.sflag [#allocation4], %s947_s29 }
 0x5a0   : > { %p1195_p1 = pnand %p1791_p12, %p1790_p9 }
 0x5a2   : > { %1415 = dma.done.wait (!%p1195_p1), %s948_s20, 128  }
 0x5a3   : > { %1417 = vsyncadd (!%p1195_p1), %s948_s20, 4294967168  ;;  %p20_p13 = scmp.ge.s32.totalorder %s1599_s8, 4   ;;  %s1792_s21 = smov %s1424_s22 }
 0x5a4   : > { %s1793_s22 = smov %s1428_s23  ;;  %s1794_s23 = smov %s1615_s11 }
 0x5a5   : > { %s1795_s24 = smov %s1599_s8  ;;  %22 = sbr.rel (!%p20_p13) target bundleno = 6 (0x6), region = 100 }
 0x5ac   :  { %953 = vsyncpa [#allocation3], 1 }
 0x5ad   :  { %955 = vsyncpa [#allocation3 + $0x1], 1 }
 0x5ae   :  { %956 = vsyncpa [#allocation6], 1 }
 0x5af   :  { %957 = vsyncpa [#allocation4], 1 }
 0x5b0   :  { %959 = vsyncpa [#allocation4 + $0x1], 1 }

</bundles_post_ra>
